<compile_context>
chip_gen: v6e
topology: v6e:2x2x1
jax: 0.10.0
libtpu: 0.0.40
codegen_flags: <defaults>
</compile_context>

<pallas_src>
import functools

import jax
import jax.numpy as jnp
from jax.experimental import pallas as pl
from jax.experimental.pallas import tpu as pltpu


def _round_up(x, m):
    return ((x + m - 1) // m) * m


def _mlp_kernel(use_logits, n_layers, x_ref, *refs):
    """Fused MLP forward on one batch tile.

    x_ref : (in_dim, TN)                activations, batch on the lane axis
    refs  : (w0, b0, ..., w_{L-1}, b_{L-1}, out_ref)
            hidden w_i: (out_i, in_i), b_i: (out_i, 1)   [PyTorch-native W]
            last   w  : (in_last, 1),  b  : (1, 1)       [pre-transposed]
    out_ref: (1, TN)
    """
    out_ref = refs[-1]
    wb = refs[:-1]
    assert len(wb) == 2 * n_layers

    h = x_ref[...]  # f32 (in_dim, TN)

    # Hidden layers: h = relu(W @ h + b); dropout is identity at inference.
    for i in range(n_layers - 1):
        w = wb[2 * i][...]        # (out_i, in_i)
        b = wb[2 * i + 1][...]    # (out_i, 1)
        h = jnp.dot(w, h, preferred_element_type=jnp.float32) + b
        h = jnp.maximum(h, 0.0)   # ReLU

    # Final Linear(., 1): VPU multiply + sublane (XLU) reduction, no N=1 matmul.
    w_last = wb[-2][...]          # (in_last, 1)
    b_last = wb[-1][...]          # (1, 1)
    logits = jnp.sum(h * w_last, axis=0, keepdims=True) + b_last  # (1, TN)

    if not use_logits:
        logits = jax.nn.sigmoid(logits)
    out_ref[...] = logits.astype(out_ref.dtype)


def binary_mlp_forward(x, params, use_logits=False, block_n=1024):
    """Forward pass.

    x      : (batch, input_size) float32
    params : list of (W, b) in PyTorch nn.Linear convention:
             W: (out_features, in_features), b: (out_features,)
    returns: (batch, 1) float32
    """
    batch, in_dim = x.shape
    n_layers = len(params)

    # Lane-dense layout: batch on the lane axis, padded to the tile width.
    tn = min(block_n, _round_up(batch, 128))
    padded = _round_up(batch, tn)
    x_t = jnp.pad(x.T, ((0, 0), (0, padded - batch)))  # (in_dim, padded)

    flat = []
    for li, (w, b) in enumerate(params):
        if li == n_layers - 1:
            w = w.T                       # (in_last, 1) for the VPU reduce
        flat.append(w.astype(jnp.float32))
        flat.append(b.reshape(-1, 1).astype(jnp.float32))

    kernel = functools.partial(_mlp_kernel, use_logits, n_layers)

    grid = (padded // tn,)
    x_spec = pl.BlockSpec((in_dim, tn), lambda i: (0, i))
    # Weights/biases: full-array blocks with constant index_map -> stay
    # resident in VMEM across the whole batch grid.
    wb_specs = [pl.BlockSpec(a.shape, lambda i: (0, 0)) for a in flat]
    out_spec = pl.BlockSpec((1, tn), lambda i: (0, i))

    out_t = pl.pallas_call(
        kernel,
        out_shape=jax.ShapeDtypeStruct((1, padded), jnp.float32),
        grid_spec=pltpu.PrefetchScalarGridSpec(
            num_scalar_prefetch=0,
            grid=grid,
            in_specs=[x_spec] + wb_specs,
            out_specs=out_spec,
        ),
        compiler_params=pltpu.CompilerParams(
            dimension_semantics=("parallel",),
            vmem_limit_bytes=32 * 1024 * 1024,
        ),
    )(x_t, *flat)

    return out_t[:, :batch].T  # (batch, 1)


def init_binary_mlp_params(key, input_size, hidden_sizes):
    """Deterministic synthetic init matching BinaryMLP layer shapes.

    Returns list of (W, b) in PyTorch convention: W (out, in), b (out,).
    Layer dims: input_size -> hidden_sizes[0] -> ... -> hidden_sizes[-1] -> 1
    """
    dims = [input_size] + list(hidden_sizes) + [1]
    params = []
    for i in range(len(dims) - 1):
        key, kw, kb = jax.random.split(key, 3)
        fan_in = dims[i]
        bound = 1.0 / jnp.sqrt(fan_in)
        w = jax.random.uniform(kw, (dims[i + 1], dims[i]),
                               minval=-bound, maxval=bound, dtype=jnp.float32)
        b = jax.random.uniform(kb, (dims[i + 1],),
                               minval=-bound, maxval=bound, dtype=jnp.float32)
        params.append((w, b))
    return params


def reference_forward(x, params, use_logits=False):
    """Plain-JAX reference for correctness check (PyTorch Linear convention)."""
    h = x
    for i, (w, b) in enumerate(params):
        h = h @ w.T + b
        if i < len(params) - 1:
            h = jnp.maximum(h, 0.0)
    if not use_logits:
        h = jax.nn.sigmoid(h)
    return h


if __name__ == "__main__":
    key = jax.random.PRNGKey(0)

    batch = 200            # not a multiple of 128 -> exercises lane padding
    input_size = 32
    hidden_sizes = (32, 16)

    kx, kp = jax.random.split(key)
    x = jax.random.normal(kx, (batch, input_size), dtype=jnp.float32)
    params = init_binary_mlp_params(kp, input_size, hidden_sizes)

    for use_logits in (False, True):
        out = binary_mlp_forward(x, params, use_logits=use_logits)
        out = jax.block_until_ready(out)
        ref = reference_forward(x, params, use_logits=use_logits)
        assert out.shape == (batch, 1), out.shape
        assert jnp.allclose(out, ref, atol=1e-5, rtol=1e-5), (
            float(jnp.max(jnp.abs(out - ref)))
        )

    print("KERNEL_OK")
</pallas_src>

<mosaic_0001>
module attributes {stable_mosaic.version = 11 : i64} {
  func.func @_mlp_kernel(%arg0: i32, %arg1: memref<32x256xf32, #tpu.memory_space<vmem>>, %arg2: memref<32x32xf32, #tpu.memory_space<vmem>>, %arg3: memref<32x1xf32, #tpu.memory_space<vmem>>, %arg4: memref<16x32xf32, #tpu.memory_space<vmem>>, %arg5: memref<16x1xf32, #tpu.memory_space<vmem>>, %arg6: memref<16x1xf32, #tpu.memory_space<vmem>>, %arg7: memref<1x1xf32, #tpu.memory_space<vmem>>, %arg8: memref<1x256xf32, #tpu.memory_space<vmem>>) attributes {dimension_semantics = [#tpu.dimension_semantics<parallel>], iteration_bounds = array<i64: 1>, scalar_prefetch = 0 : i64, scratch_operands = 0 : i64, tpu.core_type = #tpu.core_type<tc>, window_params = [{transform_indices = @transform_0, window_bounds = array<i64: 32, 256>}, {pipeline_mode = #tpu.pipeline_mode<synchronous>, transform_indices = @transform_1, window_bounds = array<i64: 32, 32>}, {pipeline_mode = #tpu.pipeline_mode<synchronous>, transform_indices = @transform_2, window_bounds = array<i64: 32, 1>}, {pipeline_mode = #tpu.pipeline_mode<synchronous>, transform_indices = @transform_3, window_bounds = array<i64: 16, 32>}, {pipeline_mode = #tpu.pipeline_mode<synchronous>, transform_indices = @transform_4, window_bounds = array<i64: 16, 1>}, {pipeline_mode = #tpu.pipeline_mode<synchronous>, transform_indices = @transform_5, window_bounds = array<i64: 16, 1>}, {pipeline_mode = #tpu.pipeline_mode<synchronous>, transform_indices = @transform_6, window_bounds = array<i64: 1, 1>}, {transform_indices = @transform_7, window_bounds = array<i64: 1, 256>}]} {
    %c0 = arith.constant 0 : index
    %c0_0 = arith.constant 0 : index
    %0 = vector.load %arg1[%c0, %c0_0] : memref<32x256xf32, #tpu.memory_space<vmem>>, vector<32x256xf32>
    %c0_1 = arith.constant 0 : index
    %c0_2 = arith.constant 0 : index
    %1 = vector.load %arg2[%c0_1, %c0_2] : memref<32x32xf32, #tpu.memory_space<vmem>>, vector<32x32xf32>
    %c0_3 = arith.constant 0 : index
    %c0_4 = arith.constant 0 : index
    %2 = vector.load %arg3[%c0_3, %c0_4] : memref<32x1xf32, #tpu.memory_space<vmem>>, vector<32x1xf32>
    %cst = arith.constant dense<0.000000e+00> : vector<32x256xf32>
    %3 = tpu.matmul %1, %0, %cst {dimension_numbers = #tpu.dot_dimension_numbers<[1], [0], [0], [1], [0, 0, 1, 1], [], []>} : vector<32x32xf32>, vector<32x256xf32>, vector<32x256xf32> -> vector<32x256xf32>
    %4 = vector.broadcast %2 : vector<32x1xf32> to vector<32x256xf32>
    %5 = arith.addf %3, %4 : vector<32x256xf32>
    %cst_5 = arith.constant 0.000000e+00 : f32
    %6 = vector.broadcast %cst_5 : f32 to vector<32x256xf32>
    %7 = arith.maximumf %5, %6 : vector<32x256xf32>
    %c0_6 = arith.constant 0 : index
    %c0_7 = arith.constant 0 : index
    %8 = vector.load %arg4[%c0_6, %c0_7] : memref<16x32xf32, #tpu.memory_space<vmem>>, vector<16x32xf32>
    %c0_8 = arith.constant 0 : index
    %c0_9 = arith.constant 0 : index
    %9 = vector.load %arg5[%c0_8, %c0_9] : memref<16x1xf32, #tpu.memory_space<vmem>>, vector<16x1xf32>
    %cst_10 = arith.constant dense<0.000000e+00> : vector<16x256xf32>
    %10 = tpu.matmul %8, %7, %cst_10 {dimension_numbers = #tpu.dot_dimension_numbers<[1], [0], [0], [1], [0, 0, 1, 1], [], []>} : vector<16x32xf32>, vector<32x256xf32>, vector<16x256xf32> -> vector<16x256xf32>
    %11 = vector.broadcast %9 : vector<16x1xf32> to vector<16x256xf32>
    %12 = arith.addf %10, %11 : vector<16x256xf32>
    %cst_11 = arith.constant 0.000000e+00 : f32
    %13 = vector.broadcast %cst_11 : f32 to vector<16x256xf32>
    %14 = arith.maximumf %12, %13 : vector<16x256xf32>
    %c0_12 = arith.constant 0 : index
    %c0_13 = arith.constant 0 : index
    %15 = vector.load %arg6[%c0_12, %c0_13] : memref<16x1xf32, #tpu.memory_space<vmem>>, vector<16x1xf32>
    %c0_14 = arith.constant 0 : index
    %c0_15 = arith.constant 0 : index
    %16 = vector.load %arg7[%c0_14, %c0_15] : memref<1x1xf32, #tpu.memory_space<vmem>>, vector<1x1xf32>
    %17 = vector.broadcast %15 : vector<16x1xf32> to vector<16x256xf32>
    %18 = arith.mulf %14, %17 : vector<16x256xf32>
    %cst_16 = arith.constant dense<0.000000e+00> : vector<256xf32>
    %19 = vector.multi_reduction <add>, %18, %cst_16 [0] : vector<16x256xf32> to vector<256xf32>
    %20 = vector.shape_cast %19 : vector<256xf32> to vector<1x256xf32>
    %21 = vector.broadcast %16 : vector<1x1xf32> to vector<1x256xf32>
    %22 = arith.addf %20, %21 : vector<1x256xf32>
    %23 = arith.negf %22 : vector<1x256xf32>
    %24 = math.exp %23 : vector<1x256xf32>
    %cst_17 = arith.constant 1.000000e+00 : f32
    %25 = vector.broadcast %cst_17 : f32 to vector<1x256xf32>
    %26 = arith.addf %25, %24 : vector<1x256xf32>
    %27 = arith.divf %25, %26 : vector<1x256xf32>
    %c0_18 = arith.constant 0 : index
    %c0_19 = arith.constant 0 : index
    %28 = vector.load %arg8[%c0_18, %c0_19] : memref<1x256xf32, #tpu.memory_space<vmem>>, vector<1x256xf32>
    tpu.vector_store %arg8[%c0_18, %c0_19], %27 {strides = array<i32>} : memref<1x256xf32, #tpu.memory_space<vmem>>, vector<1x256xf32>,
    return
  }
  func.func @transform_0(%arg0: i32) -> (i32, i32) {
    %c0_i32 = arith.constant 0 : i32
    %c0_i32_0 = arith.constant 0 : i32
    return %c0_i32, %arg0 : i32, i32
  }
  func.func @transform_1(%arg0: i32) -> (i32, i32) {
    %c0_i32 = arith.constant 0 : i32
    %c0_i32_0 = arith.constant 0 : i32
    %c0_i32_1 = arith.constant 0 : i32
    return %c0_i32, %c0_i32_0 : i32, i32
  }
  func.func @transform_2(%arg0: i32) -> (i32, i32) {
    %c0_i32 = arith.constant 0 : i32
    %c0_i32_0 = arith.constant 0 : i32
    %c0_i32_1 = arith.constant 0 : i32
    return %c0_i32, %c0_i32_0 : i32, i32
  }
  func.func @transform_3(%arg0: i32) -> (i32, i32) {
    %c0_i32 = arith.constant 0 : i32
    %c0_i32_0 = arith.constant 0 : i32
    %c0_i32_1 = arith.constant 0 : i32
    return %c0_i32, %c0_i32_0 : i32, i32
  }
  func.func @transform_4(%arg0: i32) -> (i32, i32) {
    %c0_i32 = arith.constant 0 : i32
    %c0_i32_0 = arith.constant 0 : i32
    %c0_i32_1 = arith.constant 0 : i32
    return %c0_i32, %c0_i32_0 : i32, i32
  }
  func.func @transform_5(%arg0: i32) -> (i32, i32) {
    %c0_i32 = arith.constant 0 : i32
    %c0_i32_0 = arith.constant 0 : i32
    %c0_i32_1 = arith.constant 0 : i32
    return %c0_i32, %c0_i32_0 : i32, i32
  }
  func.func @transform_6(%arg0: i32) -> (i32, i32) {
    %c0_i32 = arith.constant 0 : i32
    %c0_i32_0 = arith.constant 0 : i32
    %c0_i32_1 = arith.constant 0 : i32
    return %c0_i32, %c0_i32_0 : i32, i32
  }
  func.func @transform_7(%arg0: i32) -> (i32, i32) {
    %c0_i32 = arith.constant 0 : i32
    %c0_i32_0 = arith.constant 0 : i32
    return %c0_i32, %arg0 : i32, i32
  }
}

</mosaic_0001>

<bundles_post_ra>
// kernel: tpu_custom_call.1
= control target key start
LH: loop header
LB: loop body
LE: loop exit
PB: predicated region body
PF: predicated region fallthrough
CT: control target
= control target key end

     0   :  { %s609_s0 = inlined_call_operand.vmem [shape: f32[32,256], index: 0, kind: input, shape index: {}]   ;;  %s610_s1 = inlined_call_operand.hbm [shape: f32[32,32], index: 1, kind: input, shape index: {}]   ;;  %s611_s2 = inlined_call_operand.vmem [shape: f32[32,1], index: 2, kind: input, shape index: {}]   ;;  %s612_s3 = inlined_call_operand.hbm [shape: f32[16,32], index: 3, kind: input, shape index: {}]   ;;  %s613_s4 = inlined_call_operand.vmem [shape: f32[16,1], index: 4, kind: input, shape index: {}]   ;;  %s614_s5 = inlined_call_operand.vmem [shape: f32[16,1], index: 5, kind: input, shape index: {}]   ;;  %s615_s6 = inlined_call_operand.<no memory space> [shape: f32[1,1], index: 6, kind: input, shape index: {}]   ;;  %s616_s7 = inlined_call_operand.hbm [shape: f32[1,256], index: 7, kind: output, shape index: {}]  }
   0x1   :  { %v12_v0 = vstv %s615_s6 }
   0x2   :  { %13 = vst [vmem:[#allocation2] sm:$0x1] %v12_v0 }
   0x3   :  { %14 = vsyncpa [#allocation4], 0 }
   0x4   :  { %15 = vsyncpa [#allocation7], 0 }
   0x5   :  { %16 = vsyncpa [#allocation5], 0  ;;  %s489_s26 = smov [#allocation3]  }
   0x6   :  { %s24_s27 = sshll.u32 %s489_s26, 4  ;;  %s25_s27 = int_to_ptr.vmem [resolvable:$true] %s24_s27 }
   0x7   :  { %s431_s28 = scalar_lea.vmem %s25_s27, 512  ;;  %p436_p1 = scmp.lt.s32.totalorder %s25_s27, %s25_s27 }
   0x8   :  { %p432_p0 = scmp.ne.s32.totalorder %s25_s27, %s431_s28  ;;  %p437_p2 = scmp.lt.s32.totalorder %s431_s28, %s431_s28 }
   0xa   :  { %p438_p3 = por %p437_p2, %p436_p1 }
   0xc   :  { %p439_p4 = pnand %p438_p3, %p432_p0 }
   0xe   :  { %442 = shalt.err (!%p439_p4)
}
   0xf   :  { %s490_s29 = smov 128   ;;  %s491_s30 = smov 8  }
  0x10   :  { %30 = dma.hbm_to_vmem [thread:$0]  %s610_s1, 512, %s25_s27, [#allocation4], %s490_s29, %s490_s29, %s491_s30  }
  0x11   :  { %s492_s6 = smov [#allocation6]  }
  0x12   :  { %s38_s10 = sshll.u32 %s492_s6, 4  ;;  %s39_s10 = int_to_ptr.vmem [resolvable:$true] %s38_s10 }
  0x13   :  { %s451_s11 = scalar_lea.vmem %s39_s10, 256  ;;  %p456_p6 = scmp.lt.s32.totalorder %s39_s10, %s39_s10 }
  0x14   :  { %p452_p5 = scmp.ne.s32.totalorder %s39_s10, %s451_s11  ;;  %p457_p7 = scmp.lt.s32.totalorder %s451_s11, %s451_s11 }
  0x16   :  { %p458_p8 = por %p457_p7, %p456_p6 }
  0x18   :  { %p459_p9 = pnand %p458_p8, %p452_p5 }
  0x1a   :  { %462 = shalt.err (!%p459_p9)
}
  0x1b   :  { %44 = dma.hbm_to_vmem [thread:$0]  %s612_s3, 256, %s39_s10, [#allocation7], %s490_s29, %s490_s29, %s491_s30  }
  0x1c   :  { %483 = dma.done.wait [#allocation4], 512  }
  0x1d   :  { %484 = vsyncadd [#allocation4], 4294966784 }
  0x1e   :  { %485 = dma.done.wait [#allocation7], 256  }
  0x1f   :  { %486 = vsyncadd [#allocation7], 4294967040  ;;  %v493_v1 = vmov 0.0   ;;  %v494_v2 = vmov 0   ;;  %v64_v3 = vld [vmem:[%s609_s0 + $0x38] sm:$0xff]  ;;  %v63_v4 = vld [vmem:[%s609_s0 + $0x30] sm:$0xff] }
  0x20   :  { %170 = vmatprep.mubr.f32.mxu0 %v493_v1  ;;  %414 = vset.pattern.permute.xlu1 %v494_v2  ;;  %v62_v5 = vld [vmem:[%s609_s0 + $0x28] sm:$0xff]  ;;  %v61_v6 = vld [vmem:[%s609_s0 + $0x20] sm:$0xff]  ;;  %v60_v7 = vld [vmem:[%s609_s0 + $0x18] sm:$0xff]  ;;  %vm93_vm0 = vcmask 261120  }
  0x21   :  { %413 = vset.pattern.permute.xlu0 %v494_v2  ;;  %287 = vmatprep.mubr.f32.mxu1 %v493_v1  ;;  %v59_v8 = vld [vmem:[%s609_s0 + $0x10] sm:$0xff]  ;;  %v58_v9 = vld [vmem:[%s609_s0 + $0x8] sm:$0xff]  ;;  %v72_v10 = vld [vmem:[%s611_s2 + $0x18] sm:$0xff] }
  0x22   :  { %130 = vmatprep.subr.mxu0 %v64_v3  ;;  %v70_v11 = vld [vmem:[%s611_s2 + $0x8] sm:$0xff]  ;;  %v57_v12 = vld [vmem:[%s609_s0] sm:$0xff]  ;;  %90 = vperm.xlu0 %413, %v72_v10   ;;  %v71_v14 = vld [vmem:[%s611_s2 + $0x10] sm:$0xff] }
  0x23   :  { %131 = vmatpush1.msra.mxu0 %v63_v4  ;;  %v65_v13 = vld [vmem:[#allocation3] sm:$0xff]  ;;  %80 = vperm.xlu1 %414, %v70_v11   ;;  %v66_v16 = vld [vmem:[#allocation3 + $0x8] sm:$0xff]  ;;  %v67_v19 = vld [vmem:[#allocation3 + $0x10] sm:$0xff] }
  0x24   :  { %132 = vmatprep.subr.mxu0 %v62_v5  ;;  %v69_v15 = vld [vmem:[%s611_s2] sm:$0xff]  ;;  %v206_v18 = vld [vmem:[%s613_s4 + $0x8] sm:$0xff] }
  0x25   :  { %133 = vmatpush1.msra.mxu0 %v61_v6  ;;  %v205_v17 = vld [vmem:[%s613_s4] sm:$0xff]  ;;  %v305_v21 = vld [vmem:[%s614_s5 + $0x8] sm:$0xff]  ;;  %s496_s4 = smov [#allocation8]  }
  0x26   :  { %134 = vmatprep.subr.mxu0 %v60_v7  ;;  %85 = vperm.xlu0 %413, %v71_v14   ;;  %v304_v20 = vld [vmem:[%s614_s5] sm:$0xff]  ;;  %v204_v53 = vld [vmem:[#allocation6 + $0x8] sm:$0xff]  ;;  %s387_s5 = sshll.u32 %s496_s4, 4  ;;  %s388_s5 = int_to_ptr.vmem [resolvable:$true] %s387_s5 }
  0x27   :  { %135 = vmatpush1.msra.mxu0 %v59_v8  ;;  %75 = vperm.xlu1 %414, %v69_v15   ;;  %v68_v22 = vld [vmem:[#allocation3 + $0x18] sm:$0xff]  ;;  %v203_v52 = vld [vmem:[#allocation6] sm:$0xff]  ;;  %v340_v8 = vlaneseq  ;;  %s463_s3 = scalar_lea.vmem %s388_s5, 32  ;;  %p468_p11 = scmp.lt.s32.totalorder %s388_s5, %s388_s5 }
  0x28   :  { %136 = vmatprep.subr.mxu0 %v58_v9  ;;  %v306_v23 = vld [vmem:[#allocation2] sm:$0x1]  ;;  %p464_p10 = scmp.ne.s32.totalorder %s388_s5, %s463_s3  ;;  %p469_p12 = scmp.lt.s32.totalorder %s463_s3, %s463_s3 }
  0x29   :  { %137 = vmatpush1.msra.mxu0 %v57_v12  ;;  %v341_v14 = vshrl.u32 %v340_v8, 7  ;;  %vm378_vm1 = vcmp.lt.s32.totalorder %v340_v8, 256 }
  0x2a   :  { %397 = vmatmul.mubr.msk.f32.vlgmr.msra.gmra.mxu0 %vm93_vm0, %v65_v13  ;;  %209 = vperm.xlu0 %413, %v205_v17   ;;  %p470_p13 = por %p469_p12, %p468_p11 }
  0x2b   :  { %176 = vmatprep.mubr.f32.mxu0 %v493_v1  ;;  %214 = vperm.xlu1 %414, %v206_v18  }
  0x2c   :  { %p471_p0 = pnand %p470_p13, %p464_p10 }
  0x2e   :  { %398 = vmatmul.mubr.msk.f32.gmra.mxu0 %vm93_vm0, %v66_v16  ;;  %309 = vperm.xlu0 %413, %v304_v20  }
  0x2f   :  { %182 = vmatprep.mubr.f32.mxu0 %v493_v1  ;;  %314 = vperm.xlu1 %414, %v305_v21  }
  0x32   :  { %399 = vmatmul.mubr.msk.f32.gmra.mxu0 %vm93_vm0, %v67_v19  ;;  %337 = vperm.xlu0 %413, %v306_v23   ;;  %v342_v19 = vsub.s32 0, %v341_v14 }
  0x33   :  { %188 = vmatprep.mubr.f32.mxu0 %v493_v1 }
  0x36   :  { %400 = vmatmul.mubr.msk.f32.gmra.mxu0 %vm93_vm0, %v68_v22 }
  0x9d   :  { %v91_v28 = vpop.permute.xlu0 %90 }
  0x9e   :  { %v81_v31 = vpop.permute.xlu1 %80 }
  0xa1   :  { %v86_v33 = vpop.permute.xlu0 %85 }
  0xa2   :  { %v76_v39 = vpop.permute.xlu1 %75 }
  0xa5   :  { %v210_v54 = vpop.permute.xlu0 %209 }
  0xa6   :  { %v215_v57 = vpop.permute.xlu1 %214 }
  0xa9   :  { %v310_v4 = vpop.permute.xlu0 %309 }
  0xaa   :  { %v315_v5 = vpop.permute.xlu1 %314 }
  0xad   :  { %v338_v22 = vpop.permute.xlu0 %337 }
  0xea   :  { %v172_v24 = vpop.f32.mrf.mxu0 }
  0xeb   :  { %v173_v46 = vadd.f32 %v172_v24, %v76_v39 }
  0xec   :  { %v174_v25 = vpop.f32.mrf.mxu0 }
  0xed   :  { %v175_v44 = vadd.f32 %v174_v25, %v76_v39  ;;  %v195_v51 = vmax.f32 %v173_v46, 0.0  ;;  %v343_v25 = vrot.slane %v338_v22, %v342_v19 }
  0xee   :  { %v178_v26 = vpop.f32.mrf.mxu0 }
  0xef   :  { %v179_v42 = vadd.f32 %v178_v26, %v81_v31  ;;  %v196_v50 = vmax.f32 %v175_v44, 0.0 }
  0xf0   :  { %v180_v27 = vpop.f32.mrf.mxu0 }
  0xf1   :  { %v181_v40 = vadd.f32 %v180_v27, %v81_v31  ;;  %v197_v49 = vmax.f32 %v179_v42, 0.0 }
  0xf2   :  { %v184_v29 = vpop.f32.mrf.mxu0 }
  0xf3   :  { %v185_v38 = vadd.f32 %v184_v29, %v86_v33  ;;  %v198_v48 = vmax.f32 %v181_v40, 0.0 }
  0xf4   :  { %v186_v30 = vpop.f32.mrf.mxu0 }
  0xf5   :  { %v187_v36 = vadd.f32 %v186_v30, %v86_v33  ;;  %v199_v47 = vmax.f32 %v185_v38, 0.0 }
  0xf6   :  { %v190_v32 = vpop.f32.mrf.mxu0 }
  0xf7   :  { %v191_v34 = vadd.f32 %v190_v32, %v91_v28  ;;  %v200_v45 = vmax.f32 %v187_v36, 0.0 }
  0xf8   :  { %v192_v35 = vpop.f32.mrf.mxu0 }
  0xf9   :  { %v193_v37 = vadd.f32 %v192_v35, %v91_v28  ;;  %v201_v43 = vmax.f32 %v191_v34, 0.0 }
  0xfb   :  { %v202_v41 = vmax.f32 %v193_v37, 0.0  ;;  %v495_v37 = vmov 1966171168  }
  0xfc   :  { %v362_v38 = vunpack.c.l.s4 %v495_v37 }
  0xfd   :  { %247 = vmatprep.subr.mxu1 %v202_v41 }
  0xfe   :  { %248 = vmatpush1.msra.mxu1 %v201_v43  ;;  %v363_v39 = vunpack.c.0.s8 %v362_v38 }
  0xff   :  { %249 = vmatprep.subr.mxu1 %v200_v45 }
 0x100   :  { %250 = vmatpush1.msra.mxu1 %v199_v47  ;;  %v366_v41 = vsub.s32 %v363_v39, %v341_v14 }
 0x101   :  { %251 = vmatprep.subr.mxu1 %v198_v48 }
 0x102   :  { %252 = vmatpush1.msra.mxu1 %v197_v49 }
 0x103   :  { %253 = vmatprep.subr.mxu1 %v196_v50 }
 0x104   :  { %254 = vmatpush1.msra.mxu1 %v195_v51 }
 0x105   :  { %401 = vmatmul.mubr.msk.f32.vlgmr.msra.gmra.mxu1 %vm93_vm0, %v203_v52 }
 0x106   :  { %293 = vmatprep.mubr.f32.mxu1 %v493_v1 }
 0x109   :  { %402 = vmatmul.mubr.msk.f32.gmra.mxu1 %vm93_vm0, %v204_v53 }
 0x1c5   :  { %v289_v55 = vpop.f32.mrf.mxu1 }
 0x1c6   :  { %v290_v56 = vadd.f32 %v289_v55, %v210_v54 }
 0x1c7   :  { %v291_v58 = vpop.f32.mrf.mxu1 }
 0x1c8   :  { %v292_v59 = vadd.f32 %v291_v58, %v210_v54  ;;  %v300_v61 = vmax.f32 %v290_v56, 0.0 }
 0x1c9   :  { %v295_v60 = vpop.f32.mrf.mxu1 }
 0x1ca   :  { %v296_v62 = vadd.f32 %v295_v60, %v215_v57  ;;  %v301_v0 = vmax.f32 %v292_v59, 0.0  ;;  %v317_v6 = vmul.f32 %v310_v4, %v300_v61 }
 0x1cb   :  { %v297_v63 = vpop.f32.mrf.mxu1 }
 0x1cc   :  { %v302_v2 = vmax.f32 %v296_v62, 0.0  ;;  %v298_v3 = vadd.f32 %v297_v63, %v215_v57  ;;  %v318_v9 = vmul.f32 %v310_v4, %v301_v0 }
 0x1ce   :  { %v319_v1 = vmul.f32 %v315_v5, %v302_v2  ;;  %v303_v7 = vmax.f32 %v298_v3, 0.0 }
 0x1d0   :  { %v321_v10 = vadd.f32 %v319_v1, %v317_v6  ;;  %v320_v11 = vmul.f32 %v315_v5, %v303_v7 }
 0x1d2   :  { %v322_v12 = vrot.slane %v321_v10, 4  ;;  %v328_v13 = vadd.f32 %v320_v11, %v318_v9 }
 0x1d4   :  { %v323_v15 = vadd.f32 %v322_v12, %v321_v10  ;;  %v329_v16 = vrot.slane %v328_v13, 4 }
 0x1d6   :  { %v324_v17 = vrot.slane %v323_v15, 2  ;;  %v330_v18 = vadd.f32 %v329_v16, %v328_v13 }
 0x1d8   :  { %v325_v20 = vadd.f32 %v324_v17, %v323_v15  ;;  %v331_v21 = vrot.slane %v330_v18, 2 }
 0x1da   :  { %v326_v23 = vrot.slane %v325_v20, 1  ;;  %v332_v24 = vadd.f32 %v331_v21, %v330_v18 }
 0x1dc   :  { %v327_v26 = vadd.f32 %v326_v23, %v325_v20  ;;  %v333_v27 = vrot.slane %v332_v24, 1 }
 0x1de   :  { %v344_v28 = vadd.f32 %v343_v25, %v327_v26  ;;  %v334_v29 = vadd.f32 %v333_v27, %v332_v24 }
 0x1e0   :  { %v403_v30 = vmul.f32 -1.442695, %v344_v28  ;;  %v345_v31 = vadd.f32 %v343_v25, %v334_v29 }
 0x1e2   :  { %415 = vpow2.f32 %v403_v30  ;;  %v404_v32 = vmul.f32 -1.442695, %v345_v31 }
 0x1e4   :  { %417 = vpow2.f32 %v404_v32 }
 0x1ef   :  { %v416_v33 = vpop.eup %415 }
 0x1f0   :  { %v352_v34 = vadd.f32 1.0, %v416_v33 }
 0x1f1   :  { %v418_v35 = vpop.eup %417 }
 0x1f2   :  { %v353_v36 = vadd.f32 1.0, %v418_v35  ;;  %419 = vrcp.f32 %v352_v34 }
 0x1f4   :  { %421 = vrcp.f32 %v353_v36 }
 0x1ff   :  { %v420_v40 = vpop.eup %419 }
 0x201   :  { %v422_v42 = vpop.eup %421 }
 0x202   :  { %v360_v43 = vcombine.low %v420_v40, %v422_v42 }
 0x204   :  { %v367_v44 = vrot.slane %v360_v43, %v366_v41 }
 0x206   :  { %v374_v45 = vrot.slane %v367_v44, %v366_v41 }
 0x208   :  { %380 = vst.msk [vmem:[#allocation8] sm:$0x3] %vm378_vm1, %v374_v45 }
 0x209   :  { %474 = shalt.err (!%p471_p0)
}
 0x20a   :  { %390 = dma.vmem_to_hbm [thread:$0]  %s388_s5, 32, %s616_s7, [#allocation5]  }
 0x20b   :  { %487 = dma.done.wait [#allocation5], 32  }
 0x20c   :  { %488 = vsyncadd [#allocation5], 4294967264 }
 0x20d   :  { %394 = vsyncpa [#allocation4], 1 }
 0x20e   :  { %395 = vsyncpa [#allocation7], 1 }
 0x20f   :  { %396 = vsyncpa [#allocation5], 1 }

</bundles_post_ra>
